<compile_context>
chip_gen: v7x
topology: tpu7x:2x2x1
jax: 0.10.0
libtpu: 0.0.40
codegen_flags: <defaults>
</compile_context>

<pallas_src>
import functools
import math

import jax
import jax.numpy as jnp
from jax.experimental import pallas as pl
from jax.experimental.pallas import tpu as pltpu

_EPS = 1e-5


def _sigmoid(z):
    # exp and the (exact) reciprocal both run on the EUP slot.
    # pl.reciprocal(..., approx=True) is available if ~1e-3 accuracy is OK.
    return pl.reciprocal(1.0 + jnp.exp(-z), approx=False)


def _std_conv_kernel(p1_ref, w1_ref, b1_ref, sc1_ref, sh1_ref,
                     w2_ref, b2_ref, sc2_ref, sh2_ref,
                     w3a_ref, w3b_ref, b3_ref, w4_ref, b4_ref,
                     o_ref, *, rolling_size, stride2, l2_out):
    """Fully fused STDConvModel forward for one batch element (grid = batch)."""
    # ---- Conv1d as a single matmul on im2col patches (lanes = time axis) ----
    p1 = p1_ref[0]                                                     # (F*R, L1)
    z1 = jnp.dot(w1_ref[...], p1, preferred_element_type=jnp.float32)
    z1 = z1 + b1_ref[...]                                              # (C1, L1)
    a1 = jnp.maximum(z1, 0.0) * sc1_ref[...] + sh1_ref[...]            # ReLU+BN1d

    # ---- Conv2d (kernel spans the full channel height) = R small matmuls ----
    span = stride2 * (l2_out - 1) + 1
    acc = None
    for r in range(rolling_size):                                      # static loop
        if stride2 == 1:
            sl = a1[:, r:r + l2_out]                                   # (C1, L2)
        else:
            # TODO(synk): strided lane slice; correct but may relayout for s2>1.
            sl = a1[:, r:r + span:stride2]
        term = jnp.dot(w2_ref[r], sl, preferred_element_type=jnp.float32)
        acc = term if acc is None else acc + term                      # (2, L2)
    z2 = acc + b2_ref[...]
    a2 = jnp.maximum(z2, 0.0) * sc2_ref[...] + sh2_ref[...]            # ReLU+BN2d

    # ---- FC head.  Torch's Flatten is channel-major; the first Linear's
    # weight was split per conv2d channel in the wrapper, so no transpose here.
    h = jnp.dot(a2[0:1, :], w3a_ref[...], preferred_element_type=jnp.float32)
    h = h + jnp.dot(a2[1:2, :], w3b_ref[...], preferred_element_type=jnp.float32)
    h = _sigmoid(h + b3_ref[...])                                      # (1, H)
    y = jnp.sum(h * w4_ref[...], axis=1, keepdims=True) + b4_ref[...]  # (1, 1)
    o_ref[0] = _sigmoid(y)


def make_std_conv_forward(input_length, num_features, rolling_size,
                          stride1=1, stride2=1):
    F = num_features
    C1 = F + 1
    R = rolling_size
    L1 = (input_length - R) // stride1 + 1
    L2 = (L1 - R) // stride2 + 1
    H = L2 // 2
    assert H >= 1, "l2_out/2 must be >= 1"

    kernel = functools.partial(_std_conv_kernel, rolling_size=R,
                               stride2=stride2, l2_out=L2)

    @jax.jit
    def forward(x, p):
        B = x.shape[0]

        # -------- wrapper-side layout plumbing (no compute hoisted) --------
        span1 = stride1 * (L1 - 1) + 1
        win = jnp.stack([x[:, :, r:r + span1:stride1] for r in range(R)], axis=2)
        p1 = win.reshape(B, F * R, L1)                                  # im2col

        inv1 = p["bn1_gamma"] * jax.lax.rsqrt(p["bn1_var"] + _EPS)
        inv2 = p["bn2_gamma"] * jax.lax.rsqrt(p["bn2_var"] + _EPS)

        operands = (
            p1,                                                         # (B,F*R,L1)
            p["conv1_w"].reshape(C1, F * R),                            # (C1,F*R)
            p["conv1_b"].reshape(C1, 1),
            inv1.reshape(C1, 1),
            (p["bn1_beta"] - p["bn1_mean"] * inv1).reshape(C1, 1),
            jnp.transpose(p["conv2_w"][:, 0], (2, 0, 1)),               # (R,2,C1)
            p["conv2_b"].reshape(2, 1),
            inv2.reshape(2, 1),
            (p["bn2_beta"] - p["bn2_mean"] * inv2).reshape(2, 1),
            p["fc1_w"][:, :L2].T,                                       # (L2,H)
            p["fc1_w"][:, L2:].T,                                       # (L2,H)
            p["fc1_b"].reshape(1, H),
            p["fc2_w"].reshape(1, H),
            p["fc2_b"].reshape(1, 1),
        )

        in_specs = [
            pl.BlockSpec((1, F * R, L1), lambda b: (b, 0, 0)),
            pl.BlockSpec((C1, F * R), lambda b: (0, 0)),
            pl.BlockSpec((C1, 1), lambda b: (0, 0)),
            pl.BlockSpec((C1, 1), lambda b: (0, 0)),
            pl.BlockSpec((C1, 1), lambda b: (0, 0)),
            pl.BlockSpec((R, 2, C1), lambda b: (0, 0, 0)),
            pl.BlockSpec((2, 1), lambda b: (0, 0)),
            pl.BlockSpec((2, 1), lambda b: (0, 0)),
            pl.BlockSpec((2, 1), lambda b: (0, 0)),
            pl.BlockSpec((L2, H), lambda b: (0, 0)),
            pl.BlockSpec((L2, H), lambda b: (0, 0)),
            pl.BlockSpec((1, H), lambda b: (0, 0)),
            pl.BlockSpec((1, H), lambda b: (0, 0)),
            pl.BlockSpec((1, 1), lambda b: (0, 0)),
        ]

        flops = B * (2 * C1 * F * R * L1 + 2 * 2 * C1 * R * L2
                     + 2 * (2 * L2) * H + 2 * H)
        bytes_accessed = 4 * (sum(op.size for op in operands) + B)

        out = pl.pallas_call(
            kernel,
            out_shape=jax.ShapeDtypeStruct((B, 1, 1), jnp.float32),
            grid=(B,),
            in_specs=in_specs,
            out_specs=pl.BlockSpec((1, 1, 1), lambda b: (b, 0, 0)),
            compiler_params=pltpu.CompilerParams(
                dimension_semantics=("parallel",)),
            cost_estimate=pl.CostEstimate(
                flops=flops,
                transcendentals=B * (H + 1),
                bytes_accessed=bytes_accessed),
        )(*operands)
        return out.reshape(B, 1)

    return forward


class STDConvModelPallas:
    """JAX/Pallas port of STDConvModel (inference-mode BatchNorm)."""

    def __init__(self, input_length, num_features, rolling_size,
                 stride1=1, stride2=1, *, key):
        F = num_features
        C1 = F + 1
        R = rolling_size
        L1 = (input_length - R) // stride1 + 1
        L2 = (L1 - R) // stride2 + 1
        H = L2 // 2

        def uniform(k, shape, bound):
            return jax.random.uniform(k, shape, jnp.float32, -bound, bound)

        keys = jax.random.split(key, 16)
        b_c1 = 1.0 / math.sqrt(F * R)
        b_c2 = 1.0 / math.sqrt(1 * C1 * R)
        b_f1 = 1.0 / math.sqrt(2 * L2)
        b_f2 = 1.0 / math.sqrt(H)
        # BatchNorm running stats / affine are randomized (instead of the
        # PyTorch defaults gamma=1, beta=0, mean=0, var=1) so the BN path is
        # actually exercised; the math is the same inference-mode BN.
        self.params = {
            "conv1_w": uniform(keys[0], (C1, F, R), b_c1),
            "conv1_b": uniform(keys[1], (C1,), b_c1),
            "bn1_gamma": jax.random.uniform(keys[2], (C1,), jnp.float32, 0.5, 1.5),
            "bn1_beta": 0.1 * jax.random.normal(keys[3], (C1,), jnp.float32),
            "bn1_mean": 0.1 * jax.random.normal(keys[4], (C1,), jnp.float32),
            "bn1_var": jax.random.uniform(keys[5], (C1,), jnp.float32, 0.5, 1.5),
            "conv2_w": uniform(keys[6], (2, 1, C1, R), b_c2),
            "conv2_b": uniform(keys[7], (2,), b_c2),
            "bn2_gamma": jax.random.uniform(keys[8], (2,), jnp.float32, 0.5, 1.5),
            "bn2_beta": 0.1 * jax.random.normal(keys[9], (2,), jnp.float32),
            "bn2_mean": 0.1 * jax.random.normal(keys[10], (2,), jnp.float32),
            "bn2_var": jax.random.uniform(keys[11], (2,), jnp.float32, 0.5, 1.5),
            "fc1_w": uniform(keys[12], (H, 2 * L2), b_f1),
            "fc1_b": uniform(keys[13], (H,), b_f1),
            "fc2_w": uniform(keys[14], (1, H), b_f2),
            "fc2_b": uniform(keys[15], (1,), b_f2),
        }
        self._forward = make_std_conv_forward(input_length, num_features,
                                              rolling_size, stride1, stride2)

    def __call__(self, x):
        return self._forward(x, self.params)


# ----------------------------- pure-JAX reference -----------------------------
def _bn_inference(x, gamma, beta, mean, var):
    inv = gamma / jnp.sqrt(var + _EPS)
    shape = (1, -1) + (1,) * (x.ndim - 2)
    return x * inv.reshape(shape) + (beta - mean * inv).reshape(shape)


def _conv1d_valid(x, w, b, stride):
    # x: (B, Cin, L), w: (Cout, Cin, R) -> (B, Cout, Lo)
    R = w.shape[-1]
    Lo = (x.shape[-1] - R) // stride + 1
    win = jnp.stack([x[:, :, t * stride:t * stride + R] for t in range(Lo)], axis=2)
    return jnp.einsum("bclr,ocr->bol", win, w) + b[None, :, None]


def reference_forward(x, p, stride1, stride2):
    out1 = _conv1d_valid(x, p["conv1_w"], p["conv1_b"], stride1)
    out1 = _bn_inference(jax.nn.relu(out1), p["bn1_gamma"], p["bn1_beta"],
                         p["bn1_mean"], p["bn1_var"])
    # Conv2d whose kernel spans the full channel height reduces to a 1D conv.
    out3 = _conv1d_valid(out1, p["conv2_w"][:, 0], p["conv2_b"], stride2)
    out3 = _bn_inference(jax.nn.relu(out3), p["bn2_gamma"], p["bn2_beta"],
                         p["bn2_mean"], p["bn2_var"])
    flat = out3.reshape(out3.shape[0], -1)        # channel-major == torch Flatten
    h = jax.nn.sigmoid(flat @ p["fc1_w"].T + p["fc1_b"])
    return jax.nn.sigmoid(h @ p["fc2_w"].T + p["fc2_b"])


if __name__ == "__main__":
    key = jax.random.PRNGKey(0)
    key, kx = jax.random.split(key)

    batch = 4
    num_features = 4
    input_length = 32
    rolling_size = 3
    stride1 = stride2 = 1

    model = STDConvModelPallas(input_length, num_features, rolling_size,
                               stride1=stride1, stride2=stride2, key=key)
    x = jax.random.normal(kx, (batch, num_features, input_length), jnp.float32)

    y = model(x)
    y = jax.block_until_ready(y)

    y_ref = reference_forward(x, model.params, stride1, stride2)
    assert y.shape == (batch, 1), y.shape
    assert jnp.allclose(y, y_ref, atol=1e-4, rtol=1e-4), \
        float(jnp.max(jnp.abs(y - y_ref)))

    print("KERNEL_OK")
</pallas_src>

<mosaic_0001>
module attributes {stable_mosaic.version = 11 : i64} {
  func.func @_std_conv_kernel(%arg0: i32, %arg1: memref<1x12x30xf32, #tpu.memory_space<vmem>>, %arg2: memref<5x12xf32, #tpu.memory_space<vmem>>, %arg3: memref<5x1xf32, #tpu.memory_space<vmem>>, %arg4: memref<5x1xf32, #tpu.memory_space<vmem>>, %arg5: memref<5x1xf32, #tpu.memory_space<vmem>>, %arg6: memref<3x2x5xf32, #tpu.memory_space<vmem>>, %arg7: memref<2x1xf32, #tpu.memory_space<vmem>>, %arg8: memref<2x1xf32, #tpu.memory_space<vmem>>, %arg9: memref<2x1xf32, #tpu.memory_space<vmem>>, %arg10: memref<28x14xf32, #tpu.memory_space<vmem>>, %arg11: memref<28x14xf32, #tpu.memory_space<vmem>>, %arg12: memref<1x14xf32, #tpu.memory_space<vmem>>, %arg13: memref<1x14xf32, #tpu.memory_space<vmem>>, %arg14: memref<1x1xf32, #tpu.memory_space<vmem>>, %arg15: memref<1x1x1xf32, #tpu.memory_space<vmem>>) attributes {dimension_semantics = [#tpu.dimension_semantics<parallel>], iteration_bounds = array<i64: 4>, scalar_prefetch = 0 : i64, scratch_operands = 0 : i64, tpu.core_type = #tpu.core_type<tc>, window_params = [{transform_indices = @transform_0, window_bounds = array<i64: 1, 12, 30>}, {pipeline_mode = #tpu.pipeline_mode<synchronous>, transform_indices = @transform_1, window_bounds = array<i64: 5, 12>}, {pipeline_mode = #tpu.pipeline_mode<synchronous>, transform_indices = @transform_2, window_bounds = array<i64: 5, 1>}, {pipeline_mode = #tpu.pipeline_mode<synchronous>, transform_indices = @transform_3, window_bounds = array<i64: 5, 1>}, {pipeline_mode = #tpu.pipeline_mode<synchronous>, transform_indices = @transform_4, window_bounds = array<i64: 5, 1>}, {pipeline_mode = #tpu.pipeline_mode<synchronous>, transform_indices = @transform_5, window_bounds = array<i64: 3, 2, 5>}, {pipeline_mode = #tpu.pipeline_mode<synchronous>, transform_indices = @transform_6, window_bounds = array<i64: 2, 1>}, {pipeline_mode = #tpu.pipeline_mode<synchronous>, transform_indices = @transform_7, window_bounds = array<i64: 2, 1>}, {pipeline_mode = #tpu.pipeline_mode<synchronous>, transform_indices = @transform_8, window_bounds = array<i64: 2, 1>}, {pipeline_mode = #tpu.pipeline_mode<synchronous>, transform_indices = @transform_9, window_bounds = array<i64: 28, 14>}, {pipeline_mode = #tpu.pipeline_mode<synchronous>, transform_indices = @transform_10, window_bounds = array<i64: 28, 14>}, {pipeline_mode = #tpu.pipeline_mode<synchronous>, transform_indices = @transform_11, window_bounds = array<i64: 1, 14>}, {pipeline_mode = #tpu.pipeline_mode<synchronous>, transform_indices = @transform_12, window_bounds = array<i64: 1, 14>}, {pipeline_mode = #tpu.pipeline_mode<synchronous>, transform_indices = @transform_13, window_bounds = array<i64: 1, 1>}, {transform_indices = @transform_14, window_bounds = array<i64: 1, 1, 1>}]} {
    %c0 = arith.constant 0 : index
    %c0_0 = arith.constant 0 : index
    %c0_1 = arith.constant 0 : index
    %0 = vector.load %arg1[%c0, %c0_0, %c0_1] : memref<1x12x30xf32, #tpu.memory_space<vmem>>, vector<1x12x30xf32>
    %1 = vector.shape_cast %0 : vector<1x12x30xf32> to vector<12x30xf32>
    %c0_2 = arith.constant 0 : index
    %c0_3 = arith.constant 0 : index
    %2 = vector.load %arg2[%c0_2, %c0_3] : memref<5x12xf32, #tpu.memory_space<vmem>>, vector<5x12xf32>
    %cst = arith.constant dense<0.000000e+00> : vector<5x30xf32>
    %3 = tpu.matmul %2, %1, %cst {dimension_numbers = #tpu.dot_dimension_numbers<[1], [0], [0], [1], [0, 0, 1, 1], [], []>} : vector<5x12xf32>, vector<12x30xf32>, vector<5x30xf32> -> vector<5x30xf32>
    %c0_4 = arith.constant 0 : index
    %c0_5 = arith.constant 0 : index
    %4 = vector.load %arg3[%c0_4, %c0_5] : memref<5x1xf32, #tpu.memory_space<vmem>>, vector<5x1xf32>
    %5 = vector.broadcast %4 : vector<5x1xf32> to vector<5x30xf32>
    %6 = arith.addf %3, %5 : vector<5x30xf32>
    %cst_6 = arith.constant 0.000000e+00 : f32
    %7 = vector.broadcast %cst_6 : f32 to vector<5x30xf32>
    %8 = arith.maximumf %6, %7 : vector<5x30xf32>
    %c0_7 = arith.constant 0 : index
    %c0_8 = arith.constant 0 : index
    %9 = vector.load %arg4[%c0_7, %c0_8] : memref<5x1xf32, #tpu.memory_space<vmem>>, vector<5x1xf32>
    %10 = vector.broadcast %9 : vector<5x1xf32> to vector<5x30xf32>
    %11 = arith.mulf %8, %10 : vector<5x30xf32>
    %c0_9 = arith.constant 0 : index
    %c0_10 = arith.constant 0 : index
    %12 = vector.load %arg5[%c0_9, %c0_10] : memref<5x1xf32, #tpu.memory_space<vmem>>, vector<5x1xf32>
    %13 = vector.broadcast %12 : vector<5x1xf32> to vector<5x30xf32>
    %14 = arith.addf %11, %13 : vector<5x30xf32>
    %15 = vector.extract_strided_slice %14 {offsets = [0, 0], sizes = [5, 28], strides = [1, 1]} : vector<5x30xf32> to vector<5x28xf32>
    %c0_11 = arith.constant 0 : index
    %c0_12 = arith.constant 0 : index
    %c0_13 = arith.constant 0 : index
    %16 = vector.load %arg6[%c0_11, %c0_12, %c0_13] : memref<3x2x5xf32, #tpu.memory_space<vmem>>, vector<1x2x5xf32>
    %17 = vector.shape_cast %16 : vector<1x2x5xf32> to vector<2x5xf32>
    %cst_14 = arith.constant dense<0.000000e+00> : vector<2x28xf32>
    %18 = tpu.matmul %17, %15, %cst_14 {dimension_numbers = #tpu.dot_dimension_numbers<[1], [0], [0], [1], [0, 0, 1, 1], [], []>} : vector<2x5xf32>, vector<5x28xf32>, vector<2x28xf32> -> vector<2x28xf32>
    %19 = vector.extract_strided_slice %14 {offsets = [0, 1], sizes = [5, 28], strides = [1, 1]} : vector<5x30xf32> to vector<5x28xf32>
    %c1 = arith.constant 1 : index
    %c0_15 = arith.constant 0 : index
    %c0_16 = arith.constant 0 : index
    %20 = vector.load %arg6[%c1, %c0_15, %c0_16] : memref<3x2x5xf32, #tpu.memory_space<vmem>>, vector<1x2x5xf32>
    %21 = vector.shape_cast %20 : vector<1x2x5xf32> to vector<2x5xf32>
    %cst_17 = arith.constant dense<0.000000e+00> : vector<2x28xf32>
    %22 = tpu.matmul %21, %19, %cst_17 {dimension_numbers = #tpu.dot_dimension_numbers<[1], [0], [0], [1], [0, 0, 1, 1], [], []>} : vector<2x5xf32>, vector<5x28xf32>, vector<2x28xf32> -> vector<2x28xf32>
    %23 = arith.addf %18, %22 : vector<2x28xf32>
    %24 = vector.extract_strided_slice %14 {offsets = [0, 2], sizes = [5, 28], strides = [1, 1]} : vector<5x30xf32> to vector<5x28xf32>
    %c2 = arith.constant 2 : index
    %c0_18 = arith.constant 0 : index
    %c0_19 = arith.constant 0 : index
    %25 = vector.load %arg6[%c2, %c0_18, %c0_19] : memref<3x2x5xf32, #tpu.memory_space<vmem>>, vector<1x2x5xf32>
    %26 = vector.shape_cast %25 : vector<1x2x5xf32> to vector<2x5xf32>
    %cst_20 = arith.constant dense<0.000000e+00> : vector<2x28xf32>
    %27 = tpu.matmul %26, %24, %cst_20 {dimension_numbers = #tpu.dot_dimension_numbers<[1], [0], [0], [1], [0, 0, 1, 1], [], []>} : vector<2x5xf32>, vector<5x28xf32>, vector<2x28xf32> -> vector<2x28xf32>
    %28 = arith.addf %23, %27 : vector<2x28xf32>
    %c0_21 = arith.constant 0 : index
    %c0_22 = arith.constant 0 : index
    %29 = vector.load %arg7[%c0_21, %c0_22] : memref<2x1xf32, #tpu.memory_space<vmem>>, vector<2x1xf32>
    %30 = vector.broadcast %29 : vector<2x1xf32> to vector<2x28xf32>
    %31 = arith.addf %28, %30 : vector<2x28xf32>
    %cst_23 = arith.constant 0.000000e+00 : f32
    %32 = vector.broadcast %cst_23 : f32 to vector<2x28xf32>
    %33 = arith.maximumf %31, %32 : vector<2x28xf32>
    %c0_24 = arith.constant 0 : index
    %c0_25 = arith.constant 0 : index
    %34 = vector.load %arg8[%c0_24, %c0_25] : memref<2x1xf32, #tpu.memory_space<vmem>>, vector<2x1xf32>
    %35 = vector.broadcast %34 : vector<2x1xf32> to vector<2x28xf32>
    %36 = arith.mulf %33, %35 : vector<2x28xf32>
    %c0_26 = arith.constant 0 : index
    %c0_27 = arith.constant 0 : index
    %37 = vector.load %arg9[%c0_26, %c0_27] : memref<2x1xf32, #tpu.memory_space<vmem>>, vector<2x1xf32>
    %38 = vector.broadcast %37 : vector<2x1xf32> to vector<2x28xf32>
    %39 = arith.addf %36, %38 : vector<2x28xf32>
    %40 = vector.extract_strided_slice %39 {offsets = [0, 0], sizes = [1, 28], strides = [1, 1]} : vector<2x28xf32> to vector<1x28xf32>
    %c0_28 = arith.constant 0 : index
    %c0_29 = arith.constant 0 : index
    %41 = vector.load %arg10[%c0_28, %c0_29] : memref<28x14xf32, #tpu.memory_space<vmem>>, vector<28x14xf32>
    %cst_30 = arith.constant dense<0.000000e+00> : vector<1x14xf32>
    %42 = tpu.matmul %40, %41, %cst_30 {dimension_numbers = #tpu.dot_dimension_numbers<[1], [0], [0], [1], [0, 0, 1, 1], [], []>} : vector<1x28xf32>, vector<28x14xf32>, vector<1x14xf32> -> vector<1x14xf32>
    %43 = vector.extract_strided_slice %39 {offsets = [1, 0], sizes = [1, 28], strides = [1, 1]} : vector<2x28xf32> to vector<1x28xf32>
    %c0_31 = arith.constant 0 : index
    %c0_32 = arith.constant 0 : index
    %44 = vector.load %arg11[%c0_31, %c0_32] : memref<28x14xf32, #tpu.memory_space<vmem>>, vector<28x14xf32>
    %cst_33 = arith.constant dense<0.000000e+00> : vector<1x14xf32>
    %45 = tpu.matmul %43, %44, %cst_33 {dimension_numbers = #tpu.dot_dimension_numbers<[1], [0], [0], [1], [0, 0, 1, 1], [], []>} : vector<1x28xf32>, vector<28x14xf32>, vector<1x14xf32> -> vector<1x14xf32>
    %46 = arith.addf %42, %45 : vector<1x14xf32>
    %c0_34 = arith.constant 0 : index
    %c0_35 = arith.constant 0 : index
    %47 = vector.load %arg12[%c0_34, %c0_35] : memref<1x14xf32, #tpu.memory_space<vmem>>, vector<1x14xf32>
    %48 = arith.addf %46, %47 : vector<1x14xf32>
    %cst_36 = arith.constant 0.000000e+00 : f32
    %49 = vector.broadcast %cst_36 : f32 to vector<1x14xf32>
    %50 = arith.subf %49, %48 : vector<1x14xf32>
    %51 = math.exp %50 : vector<1x14xf32>
    %cst_37 = arith.constant 1.000000e+00 : f32
    %52 = vector.broadcast %cst_37 : f32 to vector<1x14xf32>
    %53 = arith.addf %52, %51 : vector<1x14xf32>
    %54 = tpu.reciprocal %53 : vector<1x14xf32> -> vector<1x14xf32>
    %c0_38 = arith.constant 0 : index
    %c0_39 = arith.constant 0 : index
    %55 = vector.load %arg13[%c0_38, %c0_39] : memref<1x14xf32, #tpu.memory_space<vmem>>, vector<1x14xf32>
    %56 = arith.mulf %54, %55 : vector<1x14xf32>
    %cst_40 = arith.constant dense<0.000000e+00> : vector<1xf32>
    %57 = vector.multi_reduction <add>, %56, %cst_40 [1] : vector<1x14xf32> to vector<1xf32>
    %58 = vector.shape_cast %57 : vector<1xf32> to vector<1x1xf32>
    %c0_41 = arith.constant 0 : index
    %c0_42 = arith.constant 0 : index
    %59 = vector.load %arg14[%c0_41, %c0_42] : memref<1x1xf32, #tpu.memory_space<vmem>>, vector<1x1xf32>
    %60 = arith.addf %58, %59 : vector<1x1xf32>
    %cst_43 = arith.constant 0.000000e+00 : f32
    %61 = vector.broadcast %cst_43 : f32 to vector<1x1xf32>
    %62 = arith.subf %61, %60 : vector<1x1xf32>
    %63 = math.exp %62 : vector<1x1xf32>
    %cst_44 = arith.constant 1.000000e+00 : f32
    %64 = vector.broadcast %cst_44 : f32 to vector<1x1xf32>
    %65 = arith.addf %64, %63 : vector<1x1xf32>
    %66 = tpu.reciprocal %65 : vector<1x1xf32> -> vector<1x1xf32>
    %c0_45 = arith.constant 0 : index
    %c0_46 = arith.constant 0 : index
    %c0_47 = arith.constant 0 : index
    %67 = vector.load %arg15[%c0_45, %c0_46, %c0_47] : memref<1x1x1xf32, #tpu.memory_space<vmem>>, vector<1x1x1xf32>
    %68 = vector.shape_cast %67 : vector<1x1x1xf32> to vector<1x1xf32>
    %69 = vector.shape_cast %66 : vector<1x1xf32> to vector<1x1x1xf32>
    tpu.vector_store %arg15[%c0_45, %c0_46, %c0_47], %69 {strides = array<i32>} : memref<1x1x1xf32, #tpu.memory_space<vmem>>, vector<1x1x1xf32>,
    return
  }
  func.func @transform_0(%arg0: i32) -> (i32, i32, i32) {
    %c0_i32 = arith.constant 0 : i32
    %c0_i32_0 = arith.constant 0 : i32
    %c0_i32_1 = arith.constant 0 : i32
    return %arg0, %c0_i32, %c0_i32_0 : i32, i32, i32
  }
  func.func @transform_1(%arg0: i32) -> (i32, i32) {
    %c0_i32 = arith.constant 0 : i32
    %c0_i32_0 = arith.constant 0 : i32
    %c0_i32_1 = arith.constant 0 : i32
    return %c0_i32, %c0_i32_0 : i32, i32
  }
  func.func @transform_2(%arg0: i32) -> (i32, i32) {
    %c0_i32 = arith.constant 0 : i32
    %c0_i32_0 = arith.constant 0 : i32
    %c0_i32_1 = arith.constant 0 : i32
    return %c0_i32, %c0_i32_0 : i32, i32
  }
  func.func @transform_3(%arg0: i32) -> (i32, i32) {
    %c0_i32 = arith.constant 0 : i32
    %c0_i32_0 = arith.constant 0 : i32
    %c0_i32_1 = arith.constant 0 : i32
    return %c0_i32, %c0_i32_0 : i32, i32
  }
  func.func @transform_4(%arg0: i32) -> (i32, i32) {
    %c0_i32 = arith.constant 0 : i32
    %c0_i32_0 = arith.constant 0 : i32
    %c0_i32_1 = arith.constant 0 : i32
    return %c0_i32, %c0_i32_0 : i32, i32
  }
  func.func @transform_5(%arg0: i32) -> (i32, i32, i32) {
    %c0_i32 = arith.constant 0 : i32
    %c0_i32_0 = arith.constant 0 : i32
    %c0_i32_1 = arith.constant 0 : i32
    %c0_i32_2 = arith.constant 0 : i32
    return %c0_i32, %c0_i32_0, %c0_i32_1 : i32, i32, i32
  }
  func.func @transform_6(%arg0: i32) -> (i32, i32) {
    %c0_i32 = arith.constant 0 : i32
    %c0_i32_0 = arith.constant 0 : i32
    %c0_i32_1 = arith.constant 0 : i32
    return %c0_i32, %c0_i32_0 : i32, i32
  }
  func.func @transform_7(%arg0: i32) -> (i32, i32) {
    %c0_i32 = arith.constant 0 : i32
    %c0_i32_0 = arith.constant 0 : i32
    %c0_i32_1 = arith.constant 0 : i32
    return %c0_i32, %c0_i32_0 : i32, i32
  }
  func.func @transform_8(%arg0: i32) -> (i32, i32) {
    %c0_i32 = arith.constant 0 : i32
    %c0_i32_0 = arith.constant 0 : i32
    %c0_i32_1 = arith.constant 0 : i32
    return %c0_i32, %c0_i32_0 : i32, i32
  }
  func.func @transform_9(%arg0: i32) -> (i32, i32) {
    %c0_i32 = arith.constant 0 : i32
    %c0_i32_0 = arith.constant 0 : i32
    %c0_i32_1 = arith.constant 0 : i32
    return %c0_i32, %c0_i32_0 : i32, i32
  }
  func.func @transform_10(%arg0: i32) -> (i32, i32) {
    %c0_i32 = arith.constant 0 : i32
    %c0_i32_0 = arith.constant 0 : i32
    %c0_i32_1 = arith.constant 0 : i32
    return %c0_i32, %c0_i32_0 : i32, i32
  }
  func.func @transform_11(%arg0: i32) -> (i32, i32) {
    %c0_i32 = arith.constant 0 : i32
    %c0_i32_0 = arith.constant 0 : i32
    %c0_i32_1 = arith.constant 0 : i32
    return %c0_i32, %c0_i32_0 : i32, i32
  }
  func.func @transform_12(%arg0: i32) -> (i32, i32) {
    %c0_i32 = arith.constant 0 : i32
    %c0_i32_0 = arith.constant 0 : i32
    %c0_i32_1 = arith.constant 0 : i32
    return %c0_i32, %c0_i32_0 : i32, i32
  }
  func.func @transform_13(%arg0: i32) -> (i32, i32) {
    %c0_i32 = arith.constant 0 : i32
    %c0_i32_0 = arith.constant 0 : i32
    %c0_i32_1 = arith.constant 0 : i32
    return %c0_i32, %c0_i32_0 : i32, i32
  }
  func.func @transform_14(%arg0: i32) -> (i32, i32, i32) {
    %c0_i32 = arith.constant 0 : i32
    %c0_i32_0 = arith.constant 0 : i32
    %c0_i32_1 = arith.constant 0 : i32
    return %arg0, %c0_i32, %c0_i32_0 : i32, i32, i32
  }
}

</mosaic_0001>

<bundles_post_ra>
// kernel: forward.1
= control target key start
LH: loop header
LB: loop body
LE: loop exit
PB: predicated region body
PF: predicated region fallthrough
CT: control target
= control target key end

     0   :  { %s1281_s15 = smov 0   ;;  %s1392_s0 = inlined_call_operand.vmem [shape: f32[4,12,30], index: 0, kind: input, shape index: {}]   ;;  %s1393_s1 = inlined_call_operand.vmem [shape: f32[5,12], index: 1, kind: input, shape index: {}]   ;;  %s1394_s2 = inlined_call_operand.vmem [shape: f32[5,1], index: 2, kind: input, shape index: {}]   ;;  %s1395_s3 = inlined_call_operand.vmem [shape: f32[5,1], index: 3, kind: input, shape index: {}]   ;;  %s1396_s4 = inlined_call_operand.vmem [shape: f32[5,1], index: 4, kind: input, shape index: {}]   ;;  %s1397_s5 = inlined_call_operand.vmem [shape: f32[3,2,5], index: 5, kind: input, shape index: {}]   ;;  %s1398_s6 = inlined_call_operand.vmem [shape: f32[2,1], index: 6, kind: input, shape index: {}]   ;;  %s1399_s7 = inlined_call_operand.vmem [shape: f32[2,1], index: 7, kind: input, shape index: {}]   ;;  %s1400_s8 = inlined_call_operand.vmem [shape: f32[2,1], index: 8, kind: input, shape index: {}]   ;;  %s1401_s9 = inlined_call_operand.vmem [shape: f32[28,14], index: 9, kind: input, shape index: {}]   ;;  %s1402_s10 = inlined_call_operand.vmem [shape: f32[28,14], index: 10, kind: input, shape index: {}]   ;;  %s1403_s11 = inlined_call_operand.vmem [shape: f32[1,14], index: 11, kind: input, shape index: {}]   ;;  %s1404_s12 = inlined_call_operand.vmem [shape: f32[1,14], index: 12, kind: input, shape index: {}]   ;;  %s1405_s13 = inlined_call_operand.<no memory space> [shape: f32[1,1], index: 13, kind: input, shape index: {}]   ;;  %s1406_s14 = inlined_call_operand.vmem [shape: f32[4,1,1], index: 14, kind: output, shape index: {}]  }
   0x1   :  { %v19_v0 = vstv %s1405_s13 }
   0x2   :  { %20 = vst [vmem:[#allocation2] sm:$0x1] %v19_v0 }
   0x3 LB: > { %s1058_s16 = sadd.s32 4294967295, %s1194_s15   ;;  %p1062_p0 = scmp.ge.s32.totalorder %s1194_s15, 1  ;;  %s1194_s15 = sphi %s1281_s15, %s26_s15  }
   0x4   : > { %p414_p1 = scmp.lt.s32.totalorder %s1194_s15, 5 }
   0x6   : > { %p415_p2 = pnand %p1062_p0, %p414_p1 }
   0x7   : > { %p458_p3 = scmp.lt.s32.totalorder (!%p415_p2), %s1058_s16, 3  ;;  %v1196_v1 = vmov (!%p415_p2), 0.0|0.0   ;;  %vm1197_vm0 = vmmov (!%p415_p2), 0   ;;  %v1198_v2 = vmov (!%p415_p2), 0.0   ;;  %v1199_v3 = vmov (!%p415_p2), 0   ;;  %s1201_s28 = smov (!%p415_p2), 126  }
   0x8   : > { %418 = sbr.rel (%p415_p2) target bundleno = 1010 (0x3f2), region = 76  ;;  %1145 = vmatprep.subr.bf16.mxu0 (!%p415_p2), %v1196_v1  ;;  %1105 = vmatprep.mubr.msk.f32.mxu0 (!%p415_p2), %vm1197_vm0, %v1198_v2  ;;  %v469_v4 = vld [vmem:[%s1394_s2] sm:$0x1f] (!%p415_p2)  ;;  %vm479_vm1 = vcmask (!%p415_p2), 1043456   ;;  %vm1200_vm2 = vmmov (!%p415_p2), 1   ;;  %vm475_vm4 = vcmask (!%p415_p2), 97280  }
   0x9   : > { %1178 = vset.pattern.permute.xlu0 (!%p415_p2), %v1199_v3  ;;  %1179 = vset.pattern.permute.xlu1 (!%p415_p2), %v1199_v3  ;;  %v561_v5 = vld [vmem:[%s1396_s4] sm:$0x1f] (!%p415_p2)  ;;  %vm1310_vm3 = vmpackc.low (!%p415_p2), %vm479_vm1, %vm1200_vm2  ;;  %s1202_s29 = smov (!%p415_p2), 127   ;;  %vm578_vm5 = vcmask (!%p415_p2), 1044480   ;;  %vm574_vm6 = vcmask (!%p415_p2), 39936   ;;  %v829_v30 = vld [vmem:[%s1401_s9 + $0x8] sm:$0xff] (!%p415_p2) }
   0xa   : > { %472 = vperm.xlu0 (!%p415_p2), %1178, %v469_v4   ;;  %v554_v6 = vld [vmem:[%s1395_s3] sm:$0x1f] (!%p415_p2)  ;;  %564 = vperm.xlu1 (!%p415_p2), %1179, %v561_v5   ;;  %v833_v33 = vld [vmem:[%s1402_s10 + $0x8] sm:$0xff] (!%p415_p2)  ;;  %v830_v35 = vld [vmem:[%s1401_s9 + $0x10] sm:$0xff] (!%p415_p2)  ;;  %vm838_vm7 = vcmask (!%p415_p2), 228352   ;;  %vm998_vm8 = vcmask (!%p415_p2), 106496  }
   0xb   : > { %1108 = vmatprep.subr.mxu1 (!%p415_p2), %v1198_v2  ;;  %1110 = vmatprep.mubr.msk.f32.mxu1 (!%p415_p2), %vm1197_vm0, %v1198_v2  ;;  %v468_v11 = vld [vmem:[%s1393_s1] sm:$0x1f] (!%p415_p2)  ;;  %v831_v36 = vld [vmem:[%s1401_s9 + $0x18] sm:$0xf] (!%p415_p2)  ;;  %v834_v38 = vld [vmem:[%s1402_s10 + $0x10] sm:$0xff] (!%p415_p2)  ;;  %vm1009_vm9 = vcmask (!%p415_p2), 0  }
   0xc   : > { %v814_v21 = vld [vmem:[%s1399_s7] sm:$0x3] (!%p415_p2)  ;;  %v1067_v24 = vld [vmem:[%s1397_s5 + $0x2] sm:$0x3] (!%p415_p2)  ;;  %v1072_v27 = vld [vmem:[%s1397_s5 + $0x4] sm:$0x3] (!%p415_p2)  ;;  %v1160_v37 = vpack.c.bf16 (!%p415_p2), %v831_v36, %v830_v35 }
   0xd   : > { %v806_v22 = vld [vmem:[%s1398_s6] sm:$0x3] (!%p415_p2)  ;;  %v835_v39 = vld [vmem:[%s1402_s10 + $0x18] sm:$0xf] (!%p415_p2) }
   0xe   : > { %557 = vperm.xlu0 (!%p415_p2), %1178, %v554_v6   ;;  %v821_v23 = vld [vmem:[%s1400_s8] sm:$0x3] (!%p415_p2)  ;;  %v1153_v40 = vpack.c.bf16 (!%p415_p2), %v835_v39, %v834_v38 }
   0xf   : > { %s1410_s16 = smov (!%p458_p3, %s1058_s16), 3  ;;  %v568_v28 = vld [vmem:[%s1397_s5] sm:$0x3] }
  0x10   : > { %s1081_s20 = sshll.u32 %s1410_s16, 4  ;;  %v828_v29 = vld [vmem:[%s1401_s9] sm:$0xff]  ;;  %s465_s19 = scalar_lea.vmem %s1406_s14, %s1410_s16 }
  0x11   : > { %s462_s25 = scalar_lea.vmem %s1392_s0, %s1081_s20  ;;  %v1157_v31 = vpack.c.bf16 %v829_v30, %v828_v29  ;;  %v832_v32 = vld [vmem:[%s1402_s10] sm:$0xff] }
  0x12   : > { %v466_v7 = vld [vmem:[%s462_s25] sm:$0xff]  ;;  %v467_v8 = vld [vmem:[%s462_s25 + $0x8] sm:$0xf]  ;;  %v1150_v34 = vpack.c.bf16 %v833_v33, %v832_v32 }
  0x13   : > { %v1146_v10 = vpack.c.bf16 %v467_v8, %v466_v7  ;;  %v989_v60 = vld [vmem:[%s1403_s11] sm:$0x1] }
  0x14   : > { %v996_v4 = vld [vmem:[%s1404_s12] sm:$0x1] }
  0x15   : > { %1148 = vmatpush3.bf16.msk.msra.mxu0 %vm1310_vm3, %v1146_v10  ;;  %v1002_v8 = vld [vmem:[#allocation2] sm:$0x1] }
  0x16   : > { %1118 = vmatprep.subr.mxu0 %v1198_v2 }
  0x18   : > { %1106 = vmatmul.mubr.msk.f32.vlgmr.msra.gmra.mrb[0].mxu0 %vm475_vm4, %v468_v11 }
  0x19   : > { %1120 = vmatprep.mubr.msk.f32.mxu0 %vm1197_vm0, %v1198_v2 }
  0x89   : > { %v473_v12 = vpop.permute.xlu0 %472  ;;  %v565_v18 = vpop.permute.xlu1 %564 }
  0x8d   : > { %v558_v17 = vpop.permute.xlu0 %557 }
  0xeb   : > { %v549_v13 = vpop.f32.mrb[0].mxu0 }
  0xec   : > { %v550_v14 = vadd.f32 %v549_v13, %v473_v12  ;;  %v1107_v15 = vpop.f32.mrb[1].mxu0 }
  0xee   : > { %v553_v16 = vmax.f32 %v550_v14, 0.0 }
  0xf0   : > { %v560_v19 = vmul.f32 %v558_v17, %v553_v16 }
  0xf2   : > { %v567_v20 = vadd.f32 %v565_v18, %v560_v19 }
  0xf4   : > { %728 = vrot.lane.b32.xlu0 %v567_v20, %s1201_s28  ;;  %572 = vrot.lane.b32.xlu1 %v567_v20, %s1202_s29 }
  0xf8   : > { %817 = vperm.xlu0 %1178, %v814_v21   ;;  %809 = vperm.xlu1 %1179, %v806_v22  }
  0xfc   : > { %824 = vperm.xlu1 %1179, %v821_v23  }
 0x166   : > { %v729_v25 = vpop.permute.xlu0 %728  ;;  %v573_v26 = vpop.permute.xlu1 %572 }
 0x167   : > { %1109 = vmatpush3.msk.msra.mxu1 %vm578_vm5, %v573_v26  ;;  %1119 = vmatpush3.msk.msra.mxu0 %vm578_vm5, %v729_v25 }
 0x168   : > { %1111 = vmatmul.mubr.msk.f32.vlgmr.msra.gmra.mrb[0].mxu1 %vm574_vm6, %v1067_v24  ;;  %1113 = vmatprep.subr.mxu1 %v1198_v2 }
 0x169   : > { %1114 = vmatpush3.msk.msra.mxu1 %vm578_vm5, %v567_v20  ;;  %1115 = vmatprep.mubr.msk.f32.mxu1 %vm1197_vm0, %v1198_v2 }
 0x16a   : > { %1121 = vmatmul.mubr.msk.f32.vlgmr.msra.gmra.mrb[2].mxu0 %vm574_vm6, %v1072_v27  ;;  %1156 = vmatprep.subr.bf16.mxu0 %v1196_v1 }
 0x16b   : > { %1149 = vmatprep.subr.bf16.mxu1 %v1196_v1  ;;  %1142 = vmatprep.mubr.msk.f32.mxu0 %vm1197_vm0, %v1198_v2 }
 0x16c   : > { %1116 = vmatmul.mubr.msk.f32.vlgmr.msra.gmra.mrb[2].mxu1 %vm574_vm6, %v568_v28  ;;  %1158 = vmatpush3.bf16.msra.mxu0 %v1157_v31 }
 0x16d   : > { %1131 = vmatprep.mubr.msk.f32.mxu1 %vm1197_vm0, %v1198_v2  ;;  %1159 = vmatprep.subr.bf16.mxu0 %v1196_v1 }
 0x16e   : > { %1151 = vmatpush3.bf16.msra.mxu1 %v1150_v34 }
 0x16f   : > { %1152 = vmatprep.subr.bf16.mxu1 %v1196_v1 }
 0x170   : > { %1162 = vmatpush3.bf16.msk.msra.mxu0 %vm1310_vm3, %v1160_v37 }
 0x172   : > { %1155 = vmatpush3.bf16.msk.msra.mxu1 %vm1310_vm3, %v1153_v40 }
 0x177   : > { %v810_v49 = vpop.permute.xlu1 %809  ;;  %v818_v52 = vpop.permute.xlu0 %817 }
 0x17b   : > { %v825_v54 = vpop.permute.xlu1 %824 }
 0x23b   : > { %v647_v41 = vpop.f32.mrb[0].mxu1 }
 0x23c   : > { %v1112_v42 = vpop.f32.mrb[1].mxu1 }
 0x23d   : > { %v801_v43 = vpop.f32.mrb[2].mxu0 }
 0x23e   : > { %v1122_v44 = vpop.f32.mrb[3].mxu0 }
 0x23f   : > { %v722_v45 = vpop.f32.mrb[2].mxu1 }
 0x240   : > { %v723_v46 = vadd.f32 %v722_v45, %v647_v41  ;;  %v1117_v47 = vpop.f32.mrb[3].mxu1 }
 0x242   : > { %v805_v48 = vadd.f32 %v801_v43, %v723_v46 }
 0x244   : > { %v812_v50 = vadd.f32 %v810_v49, %v805_v48 }
 0x246   : > { %v813_v51 = vmax.f32 %v812_v50, 0.0 }
 0x248   : > { %v820_v53 = vmul.f32 %v818_v52, %v813_v51 }
 0x24a   : > { %v827_v55 = vadd.f32 %v825_v54, %v820_v53 }
 0x24c   : > { %v837_v56 = vrot.slane %v827_v55, 1  ;;  %1143 = vmatmul.mubr.msk.f32.vlgmr.msra.gmra.mrb[4].mxu0 %vm838_vm7, %v827_v55 }
 0x24e   : > { %1132 = vmatmul.mubr.msk.f32.vlgmr.msra.gmra.mrb[4].mxu1 %vm838_vm7, %v837_v56 }
 0x31f   : > { %v985_v57 = vpop.f32.mrb[4].mxu0 }
 0x320   : > { %v1144_v58 = vpop.f32.mrb[5].mxu0 }
 0x321   : > { %v910_v59 = vpop.f32.mrb[4].mxu1 }
 0x322   : > { %v986_v61 = vadd.f32 %v985_v57, %v910_v59  ;;  %v1133_v62 = vpop.f32.mrb[5].mxu1 }
 0x324   : > { %v990_v63 = vadd.f32 %v989_v60, %v986_v61 }
 0x326   : > { %v991_v0 = vsub.f32 0.0, %v990_v63 }
 0x328   : > { %v992_v1 = vmul.f32 1.442695, %v991_v0 }
 0x32a   : > { %1180 = vpow2.f32 %v992_v1 }
 0x334   : > { %v1181_v2 = vpop.eup %1180 }
 0x335   : > { %v994_v3 = vadd.f32 1.0, %v1181_v2 }
 0x337   : > { %1182 = vrcp.f32 %v994_v3 }
 0x341   : > { %v1183_v5 = vpop.eup %1182 }
 0x342   : > { %v997_v6 = vmul.f32 %v1183_v5, %v996_v4 }
 0x344   : > { %v999_v7 = vsel %vm998_vm8, %v997_v6, 0.0 }
 0x345   : > { %1000 = vadd.xlane.f32.xlu0 %v999_v7 }
 0x3d2   : > { %v1001_v9 = vpop.xlane.xlu0 %1000 }
 0x3d3   : > { %v1003_v10 = vadd.f32 %v1002_v8, %v1001_v9 }
 0x3d5   : > { %v1004_v11 = vsub.f32 0.0, %v1003_v10 }
 0x3d7   : > { %v1005_v12 = vmul.f32 1.442695, %v1004_v11 }
 0x3d9   : > { %1184 = vpow2.f32 %v1005_v12 }
 0x3e3   : > { %v1185_v13 = vpop.eup %1184 }
 0x3e4   : > { %v1007_v14 = vadd.f32 1.0, %v1185_v13 }
 0x3e6   : > { %1186 = vrcp.f32 %v1007_v14 }
 0x3f0   : > { %v1187_v15 = vpop.eup %1186 }
 0x3f1   : > { %1010 = vst.msk [vmem:[%s465_s19] sm:$0x1] %vm1009_vm9, %v1187_v15 }
 0x3f2 PF: > { %s26_s15 = sadd.s32 1, %s1194_s15  }
 0x3f3   : > { %p23_p4 = scmp.ge.s32.totalorder %s26_s15, 6  }
 0x3f5   :  { %25 = sbr.rel (!%p23_p4) target bundleno = 3 (0x3), region = 108 }

</bundles_post_ra>
